<compile_context>
chip_gen: v6e
topology: v6e:2x2x1
jax: 0.10.0
libtpu: 0.0.40
codegen_flags: <defaults>
</compile_context>

<pallas_src>
import jax
import jax.numpy as jnp
from jax.experimental import pallas as pl
from jax.experimental.pallas import tpu as pltpu


# --------------------------------------------------------------------------
# Kernel body
# --------------------------------------------------------------------------
def _rope_kernel(x_ref, cos_ref, sin_ref, o_ref):
    # x_ref / o_ref: (t_bh, t_s, D); cos_ref / sin_ref: (t_s, D) float32,
    # with sin pre-signed ([-sin, sin]) so rotate-half is a pure roll.
    x = x_ref[...].astype(jnp.float32)
    d = x.shape[-1]
    rot = pltpu.roll(x, shift=d // 2, axis=x.ndim - 1)   # [x2, x1] on the XLU
    o_ref[...] = (x * cos_ref[...] + rot * sin_ref[...]).astype(o_ref.dtype)
    # TODO(synk): interleaved=True (even/odd pairing) variant not implemented.


# --------------------------------------------------------------------------
# Static tiling / VMEM sizing helpers
# --------------------------------------------------------------------------
def _vmem_capacity_bytes():
    """Physical VMEM per core; conservative 64 MiB (v7x) if query unavailable."""
    try:
        info = pltpu.get_tpu_info()
        cap = int(getattr(info, "vmem_capacity_bytes", 0) or 0)
        if cap > 0:
            return cap
    except Exception:
        pass
    return 64 << 20


def _divisors(n):
    return [d for d in range(1, n + 1) if n % d == 0]


def _vmem_need(t_bh, t_s, D, itemsize, cs_bufs):
    tile = t_bh * t_s * D * itemsize          # one (t_bh, t_s, D) x / out tile
    tile_f32 = t_bh * t_s * D * 4             # in-kernel f32 temporaries
    cs = cs_bufs * 2 * t_s * D * 4            # cos + sin (f32) buffers
    return 4 * tile + cs + 3 * tile_f32       # double-buffered in+out + headroom


def _choose_tiles(BH, S, D, itemsize, target_bytes, budget_bytes):
    """Pick (t_bh, t_s): largest tile <= target that fits the VMEM budget,
    preferring >= 4 total grid steps with an even count (>= 2 per v7x core)."""
    s_cands = sorted({d for d in _divisors(S) if d % 8 == 0} | {S})
    bh_cands = _divisors(BH)
    best, best_score = (1, s_cands[0]), None
    for t_s in s_cands:
        for t_bh in bh_cands:
            tile = t_bh * t_s * D * itemsize
            steps = (BH // t_bh) * (S // t_s)
            score = (
                _vmem_need(t_bh, t_s, D, itemsize, cs_bufs=2) <= budget_bytes,
                tile <= target_bytes,
                steps >= 4,
                steps % 2 == 0,
                tile,      # then largest tile (fewest steps)
                t_s,       # then full-S tiles (cos/sin fetched less often)
            )
            if best_score is None or score > best_score:
                best, best_score = (t_bh, t_s), score
    return best


# --------------------------------------------------------------------------
# pallas_call wrapper
# --------------------------------------------------------------------------
_CS_SINGLE_BUFFER_OK = hasattr(pl, "Buffered")   # flipped off if lowering rejects


def _build_rope_call(BH, S, D, dtype, t_bh, t_s, vmem_bytes, cs_single, donate_x):
    n_bh, n_s = BH // t_bh, S // t_s
    itemsize = jnp.dtype(dtype).itemsize

    x_spec = pl.BlockSpec((t_bh, t_s, D), lambda s, b: (b, s, 0))
    out_spec = pl.BlockSpec((t_bh, t_s, D), lambda s, b: (b, s, 0))
    if cs_single:
        # Constant index map (n_s == 1): never re-fetched; one buffer suffices.
        cs_spec = pl.BlockSpec((t_s, D), lambda s, b: (s, 0),
                               pipeline_mode=pl.Buffered(1))
    else:
        cs_spec = pl.BlockSpec((t_s, D), lambda s, b: (s, 0))

    cost = pl.CostEstimate(
        flops=3 * BH * S * D,                                 # 2 mul + 1 add / elem
        transcendentals=0,
        bytes_accessed=2 * BH * S * D * itemsize + 2 * S * D * 4,  # x in+out, cos+sin
    )
    kwargs = {}
    if donate_x:
        kwargs["input_output_aliases"] = {0: 0}

    return pl.pallas_call(
        _rope_kernel,
        out_shape=jax.ShapeDtypeStruct((BH, S, D), dtype),
        grid=(n_s, n_bh),              # S outer: cos/sin re-fetched only n_s times
        in_specs=[x_spec, cs_spec, cs_spec],
        out_specs=out_spec,
        compiler_params=pltpu.CompilerParams(
            dimension_semantics=("parallel", "parallel"),
            vmem_limit_bytes=vmem_bytes,
        ),
        cost_estimate=cost,
        **kwargs,
    )


def rope_forward(x, cos_full, sin_signed, *, donate_x=False):
    """Apply RoPE. x: (..., S, D); cos_full/sin_signed: (S, D) float32 with the
    '(2 d)' repeat and rotate-half sign already baked in."""
    global _CS_SINGLE_BUFFER_OK
    assert x.ndim >= 2
    S, D = x.shape[-2], x.shape[-1]
    assert D % 2 == 0
    assert cos_full.shape == (S, D) and sin_signed.shape == (S, D)
    # TODO(synk): partial rotary (rotary_dim < head_dim) pass-through tail and
    #             per-batch (B, S, d/2) cos/sin tables not implemented.

    BH = 1
    for dim in x.shape[:-2]:
        BH *= int(dim)
    xf = x.reshape(BH, S, D)
    cos_full = cos_full.astype(jnp.float32)      # keep angles in f32 regardless of x
    sin_signed = sin_signed.astype(jnp.float32)

    itemsize = jnp.dtype(x.dtype).itemsize
    vmem_cap = _vmem_capacity_bytes()
    # Generation-aware tile target: bigger on 128 MiB parts (v5e/v6e), 4 MiB on v7x.
    target = (8 << 20) if vmem_cap >= (100 << 20) else (4 << 20)
    # Never claim the whole physical VMEM (v7x: 64 MiB phys -> ~52 MiB budget).
    budget = max(min(vmem_cap - (12 << 20), 64 << 20), 16 << 20)

    t_bh, t_s = _choose_tiles(BH, S, D, itemsize, target, budget)
    n_s = S // t_s

    def _run(cs_single):
        cs_bufs = 1 if cs_single else 2
        need = _vmem_need(t_bh, t_s, D, itemsize, cs_bufs)
        vmem_bytes = int(min(max(need + (4 << 20), 16 << 20), budget))
        fn = _build_rope_call(BH, S, D, x.dtype, t_bh, t_s, vmem_bytes,
                              cs_single, donate_x)
        return fn(xf, cos_full, sin_signed)

    out = None
    if _CS_SINGLE_BUFFER_OK and n_s == 1:
        try:
            out = _run(True)
        except Exception:
            _CS_SINGLE_BUFFER_OK = False
            out = None
    if out is None:
        out = _run(False)
    return out.reshape(x.shape)


# --------------------------------------------------------------------------
# Module-level glue (cache build hoisted out of the per-call hot path)
# --------------------------------------------------------------------------
def make_rope_tables(dim, max_seq_len, base=500000, condense_ratio=1):
    """Build cos/sin caches with the '(2 d)' repeat and rotate-half sign baked in.

    Returns (cos_full, sin_signed), each (max_seq_len, dim) float32. Mirrors
    RotaryPositionalEmbedding._prefill_cos_sin_cache.
    """
    theta = jnp.asarray(base, jnp.float32) ** (
        jnp.arange(0, dim, 2, dtype=jnp.float32) / (-dim))
    pos = jnp.arange(max_seq_len, dtype=jnp.float32) / condense_ratio
    ang = jnp.outer(pos, theta)                              # (max_seq_len, dim//2)
    cos, sin = jnp.cos(ang), jnp.sin(ang)
    cos_full = jnp.concatenate([cos, cos], axis=-1)          # (max_seq_len, dim)
    sin_signed = jnp.concatenate([-sin, sin], axis=-1)       # (max_seq_len, dim)
    return cos_full, sin_signed


class RotaryPositionalEmbedding:
    """JAX/Pallas port of gptx RotaryPositionalEmbedding (interleaved=False).

    The transcendental cache build, '(2 d)' repeat and rotate-half sign are
    hoisted to construction time; forward only slices/gathers the f32 tables
    and calls the Pallas hot path.
    """

    def __init__(self, dim, max_seq_len, base=500000, condense_ratio=1,
                 interleaved=False):
        assert not interleaved, "interleaved=True not implemented"  # TODO(synk)
        self.dim = dim
        self.max_seq_len = max_seq_len
        self.base = base
        self.condense_ratio = condense_ratio
        self.cos_full, self.sin_signed = make_rope_tables(
            dim, max_seq_len, base, condense_ratio)

    def __call__(self, x, position_idx=None, *, donate_x=False):
        S = x.shape[-2]
        if position_idx is None:
            assert S <= self.max_seq_len
            cos = self.cos_full[:S]
            sin = self.sin_signed[:S]
        else:
            position_idx = jnp.asarray(position_idx)
            # TODO(synk): batched (batch_size, seq_len) position_idx gather not implemented.
            assert position_idx.ndim == 1
            cos = self.cos_full[position_idx]
            sin = self.sin_signed[position_idx]
        return rope_forward(x, cos, sin, donate_x=donate_x)


# --------------------------------------------------------------------------
# Pure-JAX reference & self-test
# --------------------------------------------------------------------------
def _reference_rope(x, cos, sin):
    """Mirror of apply_rope(interleaved=False); cos/sin: (S, D//2)."""
    half = x.shape[-1] // 2
    cos_full = jnp.concatenate([cos, cos], axis=-1)
    sin_full = jnp.concatenate([sin, sin], axis=-1)
    x1, x2 = x[..., :half], x[..., half:]
    rot = jnp.concatenate([-x2, x1], axis=-1)
    return x * cos_full + rot * sin_full


if __name__ == "__main__":
    B, H, S, D = 2, 4, 16, 128
    MAX_SEQ_LEN = 64

    key = jax.random.PRNGKey(0)
    x = jax.random.normal(key, (B, H, S, D), dtype=jnp.float32)

    rope = RotaryPositionalEmbedding(dim=D, max_seq_len=MAX_SEQ_LEN)
    out = jax.block_until_ready(rope(x))
    assert out.shape == x.shape and out.dtype == x.dtype

    # f32 path: tight tolerance vs pure-JAX reference
    theta = jnp.asarray(500000, jnp.float32) ** (
        jnp.arange(0, D, 2, dtype=jnp.float32) / (-D))
    ang = jnp.outer(jnp.arange(S, dtype=jnp.float32), theta)
    ref = _reference_rope(x, jnp.cos(ang), jnp.sin(ang))
    assert jnp.allclose(out, ref, atol=1e-5, rtol=1e-5)

    # bf16 input: cos/sin stay f32 and math is f32 in-kernel (only I/O is bf16)
    xb = x.astype(jnp.bfloat16)
    outb = jax.block_until_ready(rope(xb))
    assert outb.dtype == jnp.bfloat16
    assert jnp.allclose(outb.astype(jnp.float32), ref, atol=6e-2, rtol=5e-2)

    # explicit 1-D position_idx path
    pos = jnp.arange(S, dtype=jnp.int32) + 3
    out_pos = jax.block_until_ready(rope(x, position_idx=pos))
    ang_p = jnp.outer(pos.astype(jnp.float32), theta)
    ref_p = _reference_rope(x, jnp.cos(ang_p), jnp.sin(ang_p))
    assert jnp.allclose(out_pos, ref_p, atol=1e-5, rtol=1e-5)

    print("KERNEL_OK")
</pallas_src>

<mosaic_0001>
module attributes {stable_mosaic.version = 11 : i64} {
  func.func @_rope_kernel(%arg0: i32, %arg1: i32, %arg2: memref<2x16x128xf32, #tpu.memory_space<vmem>>, %arg3: memref<16x128xf32, #tpu.memory_space<vmem>>, %arg4: memref<16x128xf32, #tpu.memory_space<vmem>>, %arg5: memref<2x16x128xf32, #tpu.memory_space<vmem>>) attributes {dimension_semantics = [#tpu.dimension_semantics<parallel>, #tpu.dimension_semantics<parallel>], iteration_bounds = array<i64: 1, 4>, scalar_prefetch = 0 : i64, scratch_operands = 0 : i64, tpu.core_type = #tpu.core_type<tc>, window_params = [{transform_indices = @transform_0, window_bounds = array<i64: 2, 16, 128>}, {pipeline_mode = #tpu.pipeline_mode<synchronous>, transform_indices = @transform_1, window_bounds = array<i64: 16, 128>}, {pipeline_mode = #tpu.pipeline_mode<synchronous>, transform_indices = @transform_2, window_bounds = array<i64: 16, 128>}, {transform_indices = @transform_3, window_bounds = array<i64: 2, 16, 128>}]} {
    %c0 = arith.constant 0 : index
    %c0_0 = arith.constant 0 : index
    %c0_1 = arith.constant 0 : index
    %0 = vector.load %arg2[%c0, %c0_0, %c0_1] : memref<2x16x128xf32, #tpu.memory_space<vmem>>, vector<2x16x128xf32>
    %c64_i32 = arith.constant 64 : i32
    %1 = tpu.dynamic_rotate %0 by %c64_i32 dim 2 : vector<2x16x128xf32>, i32 -> vector<2x16x128xf32>
    %c0_2 = arith.constant 0 : index
    %c0_3 = arith.constant 0 : index
    %2 = vector.load %arg3[%c0_2, %c0_3] : memref<16x128xf32, #tpu.memory_space<vmem>>, vector<16x128xf32>
    %3 = vector.shape_cast %2 : vector<16x128xf32> to vector<1x16x128xf32>
    %4 = vector.broadcast %3 : vector<1x16x128xf32> to vector<2x16x128xf32>
    %5 = arith.mulf %0, %4 : vector<2x16x128xf32>
    %c0_4 = arith.constant 0 : index
    %c0_5 = arith.constant 0 : index
    %6 = vector.load %arg4[%c0_4, %c0_5] : memref<16x128xf32, #tpu.memory_space<vmem>>, vector<16x128xf32>
    %7 = vector.shape_cast %6 : vector<16x128xf32> to vector<1x16x128xf32>
    %8 = vector.broadcast %7 : vector<1x16x128xf32> to vector<2x16x128xf32>
    %9 = arith.mulf %1, %8 : vector<2x16x128xf32>
    %10 = arith.addf %5, %9 : vector<2x16x128xf32>
    %c0_6 = arith.constant 0 : index
    %c0_7 = arith.constant 0 : index
    %c0_8 = arith.constant 0 : index
    %11 = vector.load %arg5[%c0_6, %c0_7, %c0_8] : memref<2x16x128xf32, #tpu.memory_space<vmem>>, vector<2x16x128xf32>
    tpu.vector_store %arg5[%c0_6, %c0_7, %c0_8], %10 {strides = array<i32>} : memref<2x16x128xf32, #tpu.memory_space<vmem>>, vector<2x16x128xf32>,
    return
  }
  func.func @transform_0(%arg0: i32, %arg1: i32) -> (i32, i32, i32) {
    %c0_i32 = arith.constant 0 : i32
    %c0_i32_0 = arith.constant 0 : i32
    return %arg1, %arg0, %c0_i32 : i32, i32, i32
  }
  func.func @transform_1(%arg0: i32, %arg1: i32) -> (i32, i32) {
    %c0_i32 = arith.constant 0 : i32
    %c0_i32_0 = arith.constant 0 : i32
    return %arg0, %c0_i32 : i32, i32
  }
  func.func @transform_2(%arg0: i32, %arg1: i32) -> (i32, i32) {
    %c0_i32 = arith.constant 0 : i32
    %c0_i32_0 = arith.constant 0 : i32
    return %arg0, %c0_i32 : i32, i32
  }
  func.func @transform_3(%arg0: i32, %arg1: i32) -> (i32, i32, i32) {
    %c0_i32 = arith.constant 0 : i32
    %c0_i32_0 = arith.constant 0 : i32
    return %arg1, %arg0, %c0_i32 : i32, i32, i32
  }
}

module attributes {stable_mosaic.version = 11 : i64} {
  func.func @_rope_kernel(%arg0: i32, %arg1: i32, %arg2: memref<2x16x128xf32, #tpu.memory_space<vmem>>, %arg3: memref<16x128xf32, #tpu.memory_space<vmem>>, %arg4: memref<16x128xf32, #tpu.memory_space<vmem>>, %arg5: memref<2x16x128xf32, #tpu.memory_space<vmem>>) attributes {dimension_semantics = [#tpu.dimension_semantics<parallel>, #tpu.dimension_semantics<parallel>], iteration_bounds = array<i64: 1, 4>, scalar_prefetch = 0 : i64, scratch_operands = 0 : i64, tpu.core_type = #tpu.core_type<tc>, window_params = [{transform_indices = @transform_0, window_bounds = array<i64: 2, 16, 128>}, {transform_indices = @transform_1, window_bounds = array<i64: 16, 128>}, {transform_indices = @transform_2, window_bounds = array<i64: 16, 128>}, {transform_indices = @transform_3, window_bounds = array<i64: 2, 16, 128>}]} {
    %c0 = arith.constant 0 : index
    %c0_0 = arith.constant 0 : index
    %c0_1 = arith.constant 0 : index
    %0 = vector.load %arg2[%c0, %c0_0, %c0_1] : memref<2x16x128xf32, #tpu.memory_space<vmem>>, vector<2x16x128xf32>
    %c64_i32 = arith.constant 64 : i32
    %1 = tpu.dynamic_rotate %0 by %c64_i32 dim 2 : vector<2x16x128xf32>, i32 -> vector<2x16x128xf32>
    %c0_2 = arith.constant 0 : index
    %c0_3 = arith.constant 0 : index
    %2 = vector.load %arg3[%c0_2, %c0_3] : memref<16x128xf32, #tpu.memory_space<vmem>>, vector<16x128xf32>
    %3 = vector.shape_cast %2 : vector<16x128xf32> to vector<1x16x128xf32>
    %4 = vector.broadcast %3 : vector<1x16x128xf32> to vector<2x16x128xf32>
    %5 = arith.mulf %0, %4 : vector<2x16x128xf32>
    %c0_4 = arith.constant 0 : index
    %c0_5 = arith.constant 0 : index
    %6 = vector.load %arg4[%c0_4, %c0_5] : memref<16x128xf32, #tpu.memory_space<vmem>>, vector<16x128xf32>
    %7 = vector.shape_cast %6 : vector<16x128xf32> to vector<1x16x128xf32>
    %8 = vector.broadcast %7 : vector<1x16x128xf32> to vector<2x16x128xf32>
    %9 = arith.mulf %1, %8 : vector<2x16x128xf32>
    %10 = arith.addf %5, %9 : vector<2x16x128xf32>
    %c0_6 = arith.constant 0 : index
    %c0_7 = arith.constant 0 : index
    %c0_8 = arith.constant 0 : index
    %11 = vector.load %arg5[%c0_6, %c0_7, %c0_8] : memref<2x16x128xf32, #tpu.memory_space<vmem>>, vector<2x16x128xf32>
    tpu.vector_store %arg5[%c0_6, %c0_7, %c0_8], %10 {strides = array<i32>} : memref<2x16x128xf32, #tpu.memory_space<vmem>>, vector<2x16x128xf32>,
    return
  }
  func.func @transform_0(%arg0: i32, %arg1: i32) -> (i32, i32, i32) {
    %c0_i32 = arith.constant 0 : i32
    %c0_i32_0 = arith.constant 0 : i32
    return %arg1, %arg0, %c0_i32 : i32, i32, i32
  }
  func.func @transform_1(%arg0: i32, %arg1: i32) -> (i32, i32) {
    %c0_i32 = arith.constant 0 : i32
    %c0_i32_0 = arith.constant 0 : i32
    return %arg0, %c0_i32 : i32, i32
  }
  func.func @transform_2(%arg0: i32, %arg1: i32) -> (i32, i32) {
    %c0_i32 = arith.constant 0 : i32
    %c0_i32_0 = arith.constant 0 : i32
    return %arg0, %c0_i32 : i32, i32
  }
  func.func @transform_3(%arg0: i32, %arg1: i32) -> (i32, i32, i32) {
    %c0_i32 = arith.constant 0 : i32
    %c0_i32_0 = arith.constant 0 : i32
    return %arg1, %arg0, %c0_i32 : i32, i32, i32
  }
}

</mosaic_0001>

<bundles_post_ra>
// kernel: tpu_custom_call.1
= control target key start
LH: loop header
LB: loop body
LE: loop exit
PB: predicated region body
PF: predicated region fallthrough
CT: control target
= control target key end

     0   :  { %8 = vsyncpa [#allocation3], 0  ;;  %s921_s0 = inlined_call_operand.hbm [shape: f32[8,16,128], index: 0, kind: input, shape index: {}]   ;;  %s922_s1 = inlined_call_operand.hbm [shape: f32[16,128], index: 1, kind: input, shape index: {}]   ;;  %s923_s2 = inlined_call_operand.hbm [shape: f32[16,128], index: 2, kind: input, shape index: {}]   ;;  %s924_s3 = inlined_call_operand.hbm [shape: f32[8,16,128], index: 3, kind: output, shape index: {}]  }
   0x1   :  { %10 = vsyncpa [#allocation3 + $0x1], 0 }
   0x2   :  { %11 = vsyncpa [#allocation6], 0 }
   0x3   :  { %12 = vsyncpa [#allocation4], 0 }
   0x4   :  { %14 = vsyncpa [#allocation4 + $0x1], 0  ;;  %s726_s12 = smov 0   ;;  %s728_s13 = smov 0  }
   0x5   :  { %s730_s14 = smov 0   ;;  %s732_s15 = smov 0  }
   0x6   :  { %s734_s16 = smov 0   ;;  %s736_s17 = smov 0  }
   0x7 LB: > { %s418_s18 = sadd.s32 4294967295, %s695_s17   ;;  %s419_s19 = sadd.s32 4294967294, %s695_s17   ;;  %s695_s17 = sphi %s736_s17, %s20_s17   ;;  %s691_s16 = sphi %s734_s16, %s940_s16   ;;  %s687_s15 = sphi %s732_s15, %s939_s15   ;;  %s683_s14 = sphi %s730_s14, %s938_s14   ;;  %s679_s13 = sphi %s728_s13, %s937_s13   ;;  %s675_s12 = sphi %s726_s12, %s936_s12  }
   0x8   : > { %p54_p0 = scmp.ne.s32.totalorder %s679_s13, %s675_s12  ;;  %p760_p1 = scmp.eq.s32.totalorder %s418_s18, 0 }
   0x9   : > { %p764_p2 = scmp.eq.s32.totalorder %s418_s18, 3  ;;  %p138_p3 = scmp.eq.s32.totalorder %s419_s19, 3 }
   0xa   : > { %p770_p4 = por %p760_p1, %p54_p0  ;;  %p420_p5 = scmp.ge.s32.totalorder %s695_s17, 1 }
   0xb   : > { %p775_p6 = por %p138_p3, %p54_p0  ;;  %p145_p7 = scmp.lt.s32.totalorder %s695_s17, 5 }
   0xc   : > { %s697_s25 = smov [#allocation5]   ;;  %s698_s28 = smov [#allocation7]  }
   0xd   : > { %s929_s23 = scalar_select %p775_p6, 1, 0 }
   0xe   : > { %p780_p8 = pnand %p420_p5, %p145_p7  ;;  %s160_s26 = sshll.u32 %s697_s25, 4  ;;  %s161_s26 = int_to_ptr.vmem [resolvable:$true] %s160_s26 }
   0xf   : > { %s176_s29 = sshll.u32 %s698_s28, 4  ;;  %s542_s30 = scalar_lea.vmem %s161_s26, 256  ;;  %s177_s29 = int_to_ptr.vmem [resolvable:$true] %s176_s29 }
  0x10   : > { %p455_p9 = pneg %p780_p8  ;;  %p543_p12 = scmp.ne.s32.totalorder %s161_s26, %s542_s30 }
  0x11   : > { %p550_p3 = scmp.lt.s32.totalorder %s161_s26, %s161_s26  ;;  %p551_p5 = scmp.lt.s32.totalorder %s542_s30, %s542_s30 }
  0x12   : > { %p788_p10 = pnand %p455_p9, %p760_p1 }
  0x13   : > { %p552_p7 = por %p551_p5, %p550_p3 }
  0x14   : > { %p533_p11 = pneg %p788_p10 }
  0x16   : > { %p545_p13 = pnand %p543_p12, %p533_p11 }
  0x18   : > { %p546_p0 = pneg %p545_p13 }
  0x1a   : > { %p553_p9 = pnand %p552_p7, %p546_p0 }
  0x1c   : > { %556 = shalt.err (!%p553_p9)
}
  0x1d   : > { %s925_s4 = smov 128   ;;  %s700_s5 = smov 8  }
  0x1e   : > { %458 = dma.hbm_to_vmem [thread:$0]  (!%p788_p10), %s922_s1, 256, %s161_s26, [#allocation6], %s925_s4, %s925_s4, %s700_s5  }
  0x1f   : > { %s568_s8 = scalar_lea.vmem %s177_s29, 256  ;;  %p576_p0 = scmp.lt.s32.totalorder %s177_s29, %s177_s29 }
  0x20   : > { %p569_p12 = scmp.ne.s32.totalorder %s177_s29, %s568_s8  ;;  %p577_p5 = scmp.lt.s32.totalorder %s568_s8, %s568_s8 }
  0x22   : > { %p571_p13 = pnand %p569_p12, %p533_p11  ;;  %p578_p7 = por %p577_p5, %p576_p0 }
  0x24   : > { %p572_p3 = pneg %p571_p13 }
  0x26   : > { %p579_p9 = pnand %p578_p7, %p572_p3 }
  0x28   : > { %582 = shalt.err (!%p579_p9)
}
  0x29   : > { %461 = dma.hbm_to_vmem [thread:$0]  (!%p788_p10), %s923_s2, 256, %s177_s29, [#allocation6], %s925_s4, %s925_s4, %s700_s5  }
  0x2a   : > { %s29_s11 = sadd.s32 1, %s691_s16  ;;  %s41_s18 = sadd.s32 1, %s683_s14 }
  0x2b   : > { %p30_p11 = scmp.ge.s32.totalorder %s29_s11, 4  ;;  %p48_p12 = scmp.ne.s32.totalorder %s683_s14, %s679_s13 }
  0x2c   : > { %p49_p13 = scmp.eq.s32.totalorder %s695_s17, 0  ;;  %p472_p3 = scmp.lt.s32.totalorder %s695_s17, 4 }
  0x2d   : > { %s942_s11 = smov (%p30_p11, %s29_s11), 0  ;;  %p826_p5 = por %p764_p2, %p48_p12 }
  0x2e   : > { %p50_p0 = por %p49_p13, %p48_p12  ;;  %s36_s25 = ssub.s32 %s691_s16, %s942_s11 }
  0x2f   : > { %s190_s26 = sand.u32 1, %s683_s14   ;;  %p39_p7 = scmp.eq.s32.totalorder %s36_s25, 0 }
  0x30   : > { %s424_s27 = sshll.u32 %s190_s26, 5  ;;  %s440_s28 = sshll.u32 %s691_s16, 9 }
  0x31   : > { %s835_s29 = scalar_select %p39_p7, %s683_s14, %s41_s18  }
  0x32   : > { %s203_s7 = scalar_lea.hbm %s921_s0, %s440_s28  ;;  %s194_s8 = scalar_lea.vmem [#allocation2], %s424_s27 }
  0x33   : > { %s204_s9 = sshll.u32 %s194_s8, 4  ;;  %p842_p10 = pnand %p472_p3, %p50_p0  ;;  %s205_s9 = int_to_ptr.vmem [resolvable:$true] %s204_s9 }
  0x34   : > { %s191_s10 = scalar_lea.sflag [#allocation3], %s190_s26  ;;  %s596_s25 = scalar_lea.vmem %s205_s9, 512 }
  0x35   : > { %p585_p2 = pneg %p842_p10  ;;  %p597_p9 = scmp.ne.s32.totalorder %s205_s9, %s596_s25 }
  0x36   : > { %s701_s18 = smov [#allocation2]  }
  0x37   : > { %p599_p11 = pnand %p597_p9, %p585_p2  ;;  %s601_s4 = sshll.u32 %s701_s18, 4  ;;  %s602_s4 = int_to_ptr.vmem [resolvable:$false] %s601_s4 }
  0x38   : > { %s603_s28 = scalar_lea.vmem %s602_s4, 1024  ;;  %p604_p13 = scmp.lt.s32.totalorder %s205_s9, %s602_s4 }
  0x39   : > { %p600_p12 = pneg %p599_p11  ;;  %p605_p7 = scmp.lt.s32.totalorder %s603_s28, %s596_s25 }
  0x3b   : > { %p606_p6 = por %p605_p7, %p604_p13 }
  0x3d   : > { %p607_p3 = pnand %p606_p6, %p600_p12 }
  0x3f   : > { %610 = shalt.err (!%p607_p3)
}
  0x40   : > { %s934_s27 = smov 128   ;;  %216 = sbr.rel (%p780_p8) target bundleno = 210 (0xd2), region = 32 }
  0x41   : > { %465 = dma.hbm_to_vmem [thread:$0]  (!%p842_p10), %s203_s7, 512, %s205_s9, %s191_s10, %s934_s27, %s934_s27, %s700_s5  }
  0x42   : > { %s856_s26 = sand.u32 (!%p780_p8), 1, %s679_s13  }
  0x43   : > { %s429_s4 = sshll.u32 (!%p780_p8), %s856_s26, 5  ;;  %s219_s30 = scalar_lea.sflag (!%p780_p8), [#allocation3], %s856_s26 }
  0x44   : > { %s222_s6 = scalar_lea.vmem (!%p780_p8), [#allocation2], %s429_s4 }
  0x45   : > { %662 = dma.done.wait (%p770_p4), %s219_s30, 512  }
  0x46   : > { %664 = vsyncadd (%p770_p4), %s219_s30, 4294966784 }
  0x47   : > { %666 = dma.done.wait (%p760_p1), [#allocation6], 512  }
  0x48   : > { %668 = vsyncadd (%p760_p1), [#allocation6], 4294966784  ;;  %v261_v0 = vld [vmem:[%s222_s6 + $0x10] sm:$0xff]  ;;  %v259_v1 = vld [vmem:[%s222_s6] sm:$0xff]  ;;  %s702_s24 = smov 64   ;;  %s252_s20 = scalar_lea.vmem [#allocation8], %s429_s4 }
  0x49   : > { %267 = vrot.lane.b32.xlu1 %v261_v0, %s702_s24  ;;  %263 = vrot.lane.b32.xlu0 %v259_v1, %s702_s24  ;;  %v262_v2 = vld [vmem:[%s222_s6 + $0x18] sm:$0xff]  ;;  %v260_v3 = vld [vmem:[%s222_s6 + $0x8] sm:$0xff]  ;;  %v271_v4 = vld [vmem:[#allocation5] sm:$0xff]  ;;  %s308_s22 = sshll.u32 %s252_s20, 4  ;;  %s442_s5 = sshll.u32 %s687_s15, 9  ;;  %s869_s22 = int_to_ptr.vmem [resolvable:$true] %s308_s22 }
  0x4a   : > { %v277_v5 = vld [vmem:[#allocation7] sm:$0xff]  ;;  %v275_v6 = vmul.f32 %v271_v4, %v261_v0  ;;  %v273_v7 = vmul.f32 %v271_v4, %v259_v1  ;;  %v272_v8 = vld [vmem:[#allocation5 + $0x8] sm:$0xff]  ;;  %v278_v13 = vld [vmem:[#allocation7 + $0x8] sm:$0xff]  ;;  %s874_s9 = scalar_lea.hbm %s924_s3, %s442_s5  ;;  %s292_s15 = scalar_lea.sflag [#allocation4], %s856_s26 }
  0x4b   : > { %v276_v14 = vmul.f32 %v272_v8, %v262_v2  ;;  %v274_v15 = vmul.f32 %v272_v8, %v260_v3  ;;  %s611_s21 = scalar_lea.vmem %s869_s22, 512  ;;  %s703_s10 = smov [#allocation8]  }
  0x4c   : > { %p612_p1 = scmp.ne.s32.totalorder %s869_s22, %s611_s21  ;;  %s615_s25 = sshll.u32 %s703_s10, 4  ;;  %s616_s25 = int_to_ptr.vmem [resolvable:$false] %s615_s25 }
  0x4d   : > { %269 = vrot.lane.b32.xlu1 %v262_v2, %s702_s24  ;;  %265 = vrot.lane.b32.xlu0 %v260_v3, %s702_s24  ;;  %s617_s18 = scalar_lea.vmem %s616_s25, 1024  ;;  %p618_p8 = scmp.lt.s32.totalorder %s869_s22, %s616_s25 }
  0x4e   : > { %p613_p4 = pnand %p612_p1, %p826_p5  ;;  %p619_p0 = scmp.lt.s32.totalorder %s617_s18, %s611_s21 }
  0x50   : > { %p614_p6 = pneg %p613_p4  ;;  %p620_p10 = por %p619_p0, %p618_p8 }
  0x52   : > { %p621_p2 = pnand %p620_p10, %p614_p6 }
  0xbb   : > { %v268_v9 = vpop.permute.xlu1 %267  ;;  %v264_v10 = vpop.permute.xlu0 %263 }
  0xbc   : > { %v281_v11 = vmul.f32 %v277_v5, %v268_v9  ;;  %v279_v12 = vmul.f32 %v277_v5, %v264_v10 }
  0xbe   : > { %v285_v16 = vadd.f32 %v281_v11, %v275_v6  ;;  %v283_v17 = vadd.f32 %v279_v12, %v273_v7 }
  0xbf   : > { %v270_v18 = vpop.permute.xlu1 %269  ;;  %v266_v19 = vpop.permute.xlu0 %265 }
  0xc0   : > { %289 = vst [vmem:[%s252_s20 + $0x10] sm:$0xff] %v285_v16  ;;  %287 = vst [vmem:[%s252_s20] sm:$0xff] %v283_v17  ;;  %v282_v20 = vmul.f32 %v278_v13, %v270_v18  ;;  %v280_v21 = vmul.f32 %v278_v13, %v266_v19 }
  0xc2   : > { %v286_v22 = vadd.f32 %v282_v20, %v276_v14  ;;  %v284_v23 = vadd.f32 %v280_v21, %v274_v15 }
  0xc4   : > { %290 = vst [vmem:[%s252_s20 + $0x18] sm:$0xff] %v286_v22  ;;  %288 = vst [vmem:[%s252_s20 + $0x8] sm:$0xff] %v284_v23 }
  0xc5   : > { %624 = shalt.err (!%p621_p2)
}
  0xc6   : > { %s625_s28 = scalar_lea.hbm %s874_s9, 512  ;;  %s629_s30 = scalar_lea.hbm %s924_s3, 2048 }
  0xc7   : > { %p626_p9 = scmp.ne.s32.totalorder %s874_s9, %s625_s28  ;;  %p630_p13 = scmp.lt.s32.totalorder %s874_s9, %s924_s3 }
  0xc8   : > { %p631_p7 = scmp.lt.s32.totalorder %s629_s30, %s625_s28 }
  0xc9   : > { %p627_p11 = pnand %p626_p9, %p826_p5 }
  0xca   : > { %p632_p3 = por %p631_p7, %p630_p13 }
  0xcb   : > { %p628_p12 = pneg %p627_p11 }
  0xcd   : > { %p633_p1 = pnand %p632_p3, %p628_p12 }
  0xcf   : > { %636 = shalt.err (!%p633_p1)
}
  0xd0   : > { %s704_s20 = smov 128   ;;  %s705_s5 = smov 8  }
  0xd1   : > { %453 = dma.vmem_to_hbm [thread:$0]  (%p826_p5), %s869_s22, 512, %s874_s9, %s292_s15, %s704_s20, %s704_s20, %s705_s5  }
  0xd2 PF: > { %p475_p4 = scmp.ge.s32.totalorder %s695_s17, 2  ;;  %s323_s7 = sand.u32 1, %s675_s12  }
  0xd3   : > { %p935_p6 = scmp.ne.s32.totalorder %s929_s23, 0  ;;  %s324_s8 = scalar_lea.sflag [#allocation4], %s323_s7 }
  0xd5   : > { %p467_p8 = pnand %p475_p4, %p935_p6 }
  0xd7   : > { %p468_p0 = pneg %p467_p8 }
  0xd9   : > { %670 = dma.done.wait (%p468_p0), %s324_s8, 512  }
  0xda   : > { %672 = vsyncadd (%p468_p0), %s324_s8, 4294966784  ;;  %s20_s17 = sadd.s32 1, %s695_s17   ;;  %s936_s12 = smov %s679_s13 }
  0xdb   : > { %p17_p10 = scmp.ge.s32.totalorder %s20_s17, 6   ;;  %s937_s13 = smov %s683_s14 }
  0xdc   : > { %s938_s14 = smov %s835_s29  ;;  %s939_s15 = smov %s691_s16 }
  0xdd   : > { %s940_s16 = smov %s942_s11  ;;  %19 = sbr.rel (!%p17_p10) target bundleno = 7 (0x7), region = 87 }
  0xe2   :  { %329 = vsyncpa [#allocation3], 1 }
  0xe3   :  { %331 = vsyncpa [#allocation3 + $0x1], 1 }
  0xe4   :  { %332 = vsyncpa [#allocation6], 1 }
  0xe5   :  { %333 = vsyncpa [#allocation4], 1 }
  0xe6   :  { %335 = vsyncpa [#allocation4 + $0x1], 1 }

// kernel: tpu_custom_call.1
= control target key start
LH: loop header
LB: loop body
LE: loop exit
PB: predicated region body
PF: predicated region fallthrough
CT: control target
= control target key end

     0   :  { %8 = vsyncpa [#allocation3], 0  ;;  %s921_s0 = inlined_call_operand.hbm [shape: f32[8,16,128], index: 0, kind: input, shape index: {}]   ;;  %s922_s1 = inlined_call_operand.hbm [shape: f32[16,128], index: 1, kind: input, shape index: {}]   ;;  %s923_s2 = inlined_call_operand.hbm [shape: f32[16,128], index: 2, kind: input, shape index: {}]   ;;  %s924_s3 = inlined_call_operand.hbm [shape: f32[8,16,128], index: 3, kind: output, shape index: {}]  }
   0x1   :  { %10 = vsyncpa [#allocation3 + $0x1], 0 }
   0x2   :  { %11 = vsyncpa [#allocation6], 0 }
   0x3   :  { %12 = vsyncpa [#allocation4], 0 }
   0x4   :  { %14 = vsyncpa [#allocation4 + $0x1], 0  ;;  %s726_s12 = smov 0   ;;  %s728_s13 = smov 0  }
   0x5   :  { %s730_s14 = smov 0   ;;  %s732_s15 = smov 0  }
   0x6   :  { %s734_s16 = smov 0   ;;  %s736_s17 = smov 0  }
   0x7 LB: > { %s418_s18 = sadd.s32 4294967295, %s695_s17   ;;  %s419_s19 = sadd.s32 4294967294, %s695_s17   ;;  %s695_s17 = sphi %s736_s17, %s20_s17   ;;  %s691_s16 = sphi %s734_s16, %s940_s16   ;;  %s687_s15 = sphi %s732_s15, %s939_s15   ;;  %s683_s14 = sphi %s730_s14, %s938_s14   ;;  %s679_s13 = sphi %s728_s13, %s937_s13   ;;  %s675_s12 = sphi %s726_s12, %s936_s12  }
   0x8   : > { %p54_p0 = scmp.ne.s32.totalorder %s679_s13, %s675_s12  ;;  %p760_p1 = scmp.eq.s32.totalorder %s418_s18, 0 }
   0x9   : > { %p764_p2 = scmp.eq.s32.totalorder %s418_s18, 3  ;;  %p138_p3 = scmp.eq.s32.totalorder %s419_s19, 3 }
   0xa   : > { %p770_p4 = por %p760_p1, %p54_p0  ;;  %p420_p5 = scmp.ge.s32.totalorder %s695_s17, 1 }
   0xb   : > { %p775_p6 = por %p138_p3, %p54_p0  ;;  %p145_p7 = scmp.lt.s32.totalorder %s695_s17, 5 }
   0xc   : > { %s697_s25 = smov [#allocation5]   ;;  %s698_s28 = smov [#allocation7]  }
   0xd   : > { %s929_s23 = scalar_select %p775_p6, 1, 0 }
   0xe   : > { %p780_p8 = pnand %p420_p5, %p145_p7  ;;  %s160_s26 = sshll.u32 %s697_s25, 4  ;;  %s161_s26 = int_to_ptr.vmem [resolvable:$true] %s160_s26 }
   0xf   : > { %s176_s29 = sshll.u32 %s698_s28, 4  ;;  %s542_s30 = scalar_lea.vmem %s161_s26, 256  ;;  %s177_s29 = int_to_ptr.vmem [resolvable:$true] %s176_s29 }
  0x10   : > { %p455_p9 = pneg %p780_p8  ;;  %p543_p12 = scmp.ne.s32.totalorder %s161_s26, %s542_s30 }
  0x11   : > { %p550_p3 = scmp.lt.s32.totalorder %s161_s26, %s161_s26  ;;  %p551_p5 = scmp.lt.s32.totalorder %s542_s30, %s542_s30 }
  0x12   : > { %p788_p10 = pnand %p455_p9, %p760_p1 }
  0x13   : > { %p552_p7 = por %p551_p5, %p550_p3 }
  0x14   : > { %p533_p11 = pneg %p788_p10 }
  0x16   : > { %p545_p13 = pnand %p543_p12, %p533_p11 }
  0x18   : > { %p546_p0 = pneg %p545_p13 }
  0x1a   : > { %p553_p9 = pnand %p552_p7, %p546_p0 }
  0x1c   : > { %556 = shalt.err (!%p553_p9)
}
  0x1d   : > { %s925_s4 = smov 128   ;;  %s700_s5 = smov 8  }
  0x1e   : > { %458 = dma.hbm_to_vmem [thread:$0]  (!%p788_p10), %s922_s1, 256, %s161_s26, [#allocation6], %s925_s4, %s925_s4, %s700_s5  }
  0x1f   : > { %s568_s8 = scalar_lea.vmem %s177_s29, 256  ;;  %p576_p0 = scmp.lt.s32.totalorder %s177_s29, %s177_s29 }
  0x20   : > { %p569_p12 = scmp.ne.s32.totalorder %s177_s29, %s568_s8  ;;  %p577_p5 = scmp.lt.s32.totalorder %s568_s8, %s568_s8 }
  0x22   : > { %p571_p13 = pnand %p569_p12, %p533_p11  ;;  %p578_p7 = por %p577_p5, %p576_p0 }
  0x24   : > { %p572_p3 = pneg %p571_p13 }
  0x26   : > { %p579_p9 = pnand %p578_p7, %p572_p3 }
  0x28   : > { %582 = shalt.err (!%p579_p9)
}
  0x29   : > { %461 = dma.hbm_to_vmem [thread:$0]  (!%p788_p10), %s923_s2, 256, %s177_s29, [#allocation6], %s925_s4, %s925_s4, %s700_s5  }
  0x2a   : > { %s29_s11 = sadd.s32 1, %s691_s16  ;;  %s41_s18 = sadd.s32 1, %s683_s14 }
  0x2b   : > { %p30_p11 = scmp.ge.s32.totalorder %s29_s11, 4  ;;  %p48_p12 = scmp.ne.s32.totalorder %s683_s14, %s679_s13 }
  0x2c   : > { %p49_p13 = scmp.eq.s32.totalorder %s695_s17, 0  ;;  %p472_p3 = scmp.lt.s32.totalorder %s695_s17, 4 }
  0x2d   : > { %s942_s11 = smov (%p30_p11, %s29_s11), 0  ;;  %p826_p5 = por %p764_p2, %p48_p12 }
  0x2e   : > { %p50_p0 = por %p49_p13, %p48_p12  ;;  %s36_s25 = ssub.s32 %s691_s16, %s942_s11 }
  0x2f   : > { %s190_s26 = sand.u32 1, %s683_s14   ;;  %p39_p7 = scmp.eq.s32.totalorder %s36_s25, 0 }
  0x30   : > { %s424_s27 = sshll.u32 %s190_s26, 5  ;;  %s440_s28 = sshll.u32 %s691_s16, 9 }
  0x31   : > { %s835_s29 = scalar_select %p39_p7, %s683_s14, %s41_s18  }
  0x32   : > { %s203_s7 = scalar_lea.hbm %s921_s0, %s440_s28  ;;  %s194_s8 = scalar_lea.vmem [#allocation2], %s424_s27 }
  0x33   : > { %s204_s9 = sshll.u32 %s194_s8, 4  ;;  %p842_p10 = pnand %p472_p3, %p50_p0  ;;  %s205_s9 = int_to_ptr.vmem [resolvable:$true] %s204_s9 }
  0x34   : > { %s191_s10 = scalar_lea.sflag [#allocation3], %s190_s26  ;;  %s596_s25 = scalar_lea.vmem %s205_s9, 512 }
  0x35   : > { %p585_p2 = pneg %p842_p10  ;;  %p597_p9 = scmp.ne.s32.totalorder %s205_s9, %s596_s25 }
  0x36   : > { %s701_s18 = smov [#allocation2]  }
  0x37   : > { %p599_p11 = pnand %p597_p9, %p585_p2  ;;  %s601_s4 = sshll.u32 %s701_s18, 4  ;;  %s602_s4 = int_to_ptr.vmem [resolvable:$false] %s601_s4 }
  0x38   : > { %s603_s28 = scalar_lea.vmem %s602_s4, 1024  ;;  %p604_p13 = scmp.lt.s32.totalorder %s205_s9, %s602_s4 }
  0x39   : > { %p600_p12 = pneg %p599_p11  ;;  %p605_p7 = scmp.lt.s32.totalorder %s603_s28, %s596_s25 }
  0x3b   : > { %p606_p6 = por %p605_p7, %p604_p13 }
  0x3d   : > { %p607_p3 = pnand %p606_p6, %p600_p12 }
  0x3f   : > { %610 = shalt.err (!%p607_p3)
}
  0x40   : > { %s934_s27 = smov 128   ;;  %216 = sbr.rel (%p780_p8) target bundleno = 210 (0xd2), region = 32 }
  0x41   : > { %465 = dma.hbm_to_vmem [thread:$0]  (!%p842_p10), %s203_s7, 512, %s205_s9, %s191_s10, %s934_s27, %s934_s27, %s700_s5  }
  0x42   : > { %s856_s26 = sand.u32 (!%p780_p8), 1, %s679_s13  }
  0x43   : > { %s429_s4 = sshll.u32 (!%p780_p8), %s856_s26, 5  ;;  %s219_s30 = scalar_lea.sflag (!%p780_p8), [#allocation3], %s856_s26 }
  0x44   : > { %s222_s6 = scalar_lea.vmem (!%p780_p8), [#allocation2], %s429_s4 }
  0x45   : > { %662 = dma.done.wait (%p770_p4), %s219_s30, 512  }
  0x46   : > { %664 = vsyncadd (%p770_p4), %s219_s30, 4294966784 }
  0x47   : > { %666 = dma.done.wait (%p760_p1), [#allocation6], 512  }
  0x48   : > { %668 = vsyncadd (%p760_p1), [#allocation6], 4294966784  ;;  %v261_v0 = vld [vmem:[%s222_s6 + $0x10] sm:$0xff]  ;;  %v259_v1 = vld [vmem:[%s222_s6] sm:$0xff]  ;;  %s702_s24 = smov 64   ;;  %s252_s20 = scalar_lea.vmem [#allocation8], %s429_s4 }
  0x49   : > { %267 = vrot.lane.b32.xlu1 %v261_v0, %s702_s24  ;;  %263 = vrot.lane.b32.xlu0 %v259_v1, %s702_s24  ;;  %v262_v2 = vld [vmem:[%s222_s6 + $0x18] sm:$0xff]  ;;  %v260_v3 = vld [vmem:[%s222_s6 + $0x8] sm:$0xff]  ;;  %v271_v4 = vld [vmem:[#allocation5] sm:$0xff]  ;;  %s308_s22 = sshll.u32 %s252_s20, 4  ;;  %s442_s5 = sshll.u32 %s687_s15, 9  ;;  %s869_s22 = int_to_ptr.vmem [resolvable:$true] %s308_s22 }
  0x4a   : > { %v277_v5 = vld [vmem:[#allocation7] sm:$0xff]  ;;  %v275_v6 = vmul.f32 %v271_v4, %v261_v0  ;;  %v273_v7 = vmul.f32 %v271_v4, %v259_v1  ;;  %v272_v8 = vld [vmem:[#allocation5 + $0x8] sm:$0xff]  ;;  %v278_v13 = vld [vmem:[#allocation7 + $0x8] sm:$0xff]  ;;  %s874_s9 = scalar_lea.hbm %s924_s3, %s442_s5  ;;  %s292_s15 = scalar_lea.sflag [#allocation4], %s856_s26 }
  0x4b   : > { %v276_v14 = vmul.f32 %v272_v8, %v262_v2  ;;  %v274_v15 = vmul.f32 %v272_v8, %v260_v3  ;;  %s611_s21 = scalar_lea.vmem %s869_s22, 512  ;;  %s703_s10 = smov [#allocation8]  }
  0x4c   : > { %p612_p1 = scmp.ne.s32.totalorder %s869_s22, %s611_s21  ;;  %s615_s25 = sshll.u32 %s703_s10, 4  ;;  %s616_s25 = int_to_ptr.vmem [resolvable:$false] %s615_s25 }
  0x4d   : > { %269 = vrot.lane.b32.xlu1 %v262_v2, %s702_s24  ;;  %265 = vrot.lane.b32.xlu0 %v260_v3, %s702_s24  ;;  %s617_s18 = scalar_lea.vmem %s616_s25, 1024  ;;  %p618_p8 = scmp.lt.s32.totalorder %s869_s22, %s616_s25 }
  0x4e   : > { %p613_p4 = pnand %p612_p1, %p826_p5  ;;  %p619_p0 = scmp.lt.s32.totalorder %s617_s18, %s611_s21 }
  0x50   : > { %p614_p6 = pneg %p613_p4  ;;  %p620_p10 = por %p619_p0, %p618_p8 }
  0x52   : > { %p621_p2 = pnand %p620_p10, %p614_p6 }
  0xbb   : > { %v268_v9 = vpop.permute.xlu1 %267  ;;  %v264_v10 = vpop.permute.xlu0 %263 }
  0xbc   : > { %v281_v11 = vmul.f32 %v277_v5, %v268_v9  ;;  %v279_v12 = vmul.f32 %v277_v5, %v264_v10 }
  0xbe   : > { %v285_v16 = vadd.f32 %v281_v11, %v275_v6  ;;  %v283_v17 = vadd.f32 %v279_v12, %v273_v7 }
  0xbf   : > { %v270_v18 = vpop.permute.xlu1 %269  ;;  %v266_v19 = vpop.permute.xlu0 %265 }
  0xc0   : > { %289 = vst [vmem:[%s252_s20 + $0x10] sm:$0xff] %v285_v16  ;;  %287 = vst [vmem:[%s252_s20] sm:$0xff] %v283_v17  ;;  %v282_v20 = vmul.f32 %v278_v13, %v270_v18  ;;  %v280_v21 = vmul.f32 %v278_v13, %v266_v19 }
  0xc2   : > { %v286_v22 = vadd.f32 %v282_v20, %v276_v14  ;;  %v284_v23 = vadd.f32 %v280_v21, %v274_v15 }
  0xc4   : > { %290 = vst [vmem:[%s252_s20 + $0x18] sm:$0xff] %v286_v22  ;;  %288 = vst [vmem:[%s252_s20 + $0x8] sm:$0xff] %v284_v23 }
  0xc5   : > { %624 = shalt.err (!%p621_p2)
}
  0xc6   : > { %s625_s28 = scalar_lea.hbm %s874_s9, 512  ;;  %s629_s30 = scalar_lea.hbm %s924_s3, 2048 }
  0xc7   : > { %p626_p9 = scmp.ne.s32.totalorder %s874_s9, %s625_s28  ;;  %p630_p13 = scmp.lt.s32.totalorder %s874_s9, %s924_s3 }
  0xc8   : > { %p631_p7 = scmp.lt.s32.totalorder %s629_s30, %s625_s28 }
  0xc9   : > { %p627_p11 = pnand %p626_p9, %p826_p5 }
  0xca   : > { %p632_p3 = por %p631_p7, %p630_p13 }
  0xcb   : > { %p628_p12 = pneg %p627_p11 }
  0xcd   : > { %p633_p1 = pnand %p632_p3, %p628_p12 }
  0xcf   : > { %636 = shalt.err (!%p633_p1)
}
  0xd0   : > { %s704_s20 = smov 128   ;;  %s705_s5 = smov 8  }
  0xd1   : > { %453 = dma.vmem_to_hbm [thread:$0]  (%p826_p5), %s869_s22, 512, %s874_s9, %s292_s15, %s704_s20, %s704_s20, %s705_s5  }
  0xd2 PF: > { %p475_p4 = scmp.ge.s32.totalorder %s695_s17, 2  ;;  %s323_s7 = sand.u32 1, %s675_s12  }
  0xd3   : > { %p935_p6 = scmp.ne.s32.totalorder %s929_s23, 0  ;;  %s324_s8 = scalar_lea.sflag [#allocation4], %s323_s7 }
  0xd5   : > { %p467_p8 = pnand %p475_p4, %p935_p6 }
  0xd7   : > { %p468_p0 = pneg %p467_p8 }
  0xd9   : > { %670 = dma.done.wait (%p468_p0), %s324_s8, 512  }
  0xda   : > { %672 = vsyncadd (%p468_p0), %s324_s8, 4294966784  ;;  %s20_s17 = sadd.s32 1, %s695_s17   ;;  %s936_s12 = smov %s679_s13 }
  0xdb   : > { %p17_p10 = scmp.ge.s32.totalorder %s20_s17, 6   ;;  %s937_s13 = smov %s683_s14 }
  0xdc   : > { %s938_s14 = smov %s835_s29  ;;  %s939_s15 = smov %s691_s16 }
  0xdd   : > { %s940_s16 = smov %s942_s11  ;;  %19 = sbr.rel (!%p17_p10) target bundleno = 7 (0x7), region = 87 }
  0xe2   :  { %329 = vsyncpa [#allocation3], 1 }
  0xe3   :  { %331 = vsyncpa [#allocation3 + $0x1], 1 }
  0xe4   :  { %332 = vsyncpa [#allocation6], 1 }
  0xe5   :  { %333 = vsyncpa [#allocation4], 1 }
  0xe6   :  { %335 = vsyncpa [#allocation4 + $0x1], 1 }

</bundles_post_ra>
